<compile_context>
chip_gen: v7x
topology: tpu7x:2x2x1
jax: 0.10.0
libtpu: 0.0.40
codegen_flags: <defaults>
</compile_context>

<pallas_src>
import math
import jax
import jax.numpy as jnp
from jax.experimental import pallas as pl
from jax.experimental.pallas import tpu as pltpu

# --- small, shape-consistent config (synthetic; mirrors MultimodalConfig fields) ---
VISION_HIDDEN = 32     # config.vision_hidden_size
FUSION_HIDDEN = 64     # config.fusion_hidden_size
LANGUAGE_HIDDEN = 48   # config.language_hidden_size
LN_EPS = 1e-5          # nn.LayerNorm default eps


def _vision_projection_kernel(x_ref, w1_ref, b1_ref, w2_ref, b2_ref,
                              gamma_ref, beta_ref, o_ref):
    # x_ref: (tm, VISION_HIDDEN) tile of flattened vision features.
    x = x_ref[...].astype(jnp.float32)

    # linear1: x @ W1 + b1   (W1 stored (in, out) = PyTorch weight.T)
    h = jnp.dot(x, w1_ref[...], preferred_element_type=jnp.float32) + b1_ref[...]

    # GELU (exact / erf form, matching nn.GELU() default).
    h = 0.5 * h * (1.0 + jax.lax.erf(h * (1.0 / math.sqrt(2.0))))

    # linear2: h @ W2 + b2 -> (tm, LANGUAGE_HIDDEN)
    y = jnp.dot(h, w2_ref[...], preferred_element_type=jnp.float32) + b2_ref[...]

    # LayerNorm over the (unpadded) feature axis — biased 1/N variance like PyTorch.
    mu = jnp.mean(y, axis=-1, keepdims=True)
    c = y - mu
    var = jnp.mean(c * c, axis=-1, keepdims=True)
    y_norm = c * jax.lax.rsqrt(var + LN_EPS)

    o_ref[...] = (y_norm * gamma_ref[...] + beta_ref[...]).astype(o_ref.dtype)


def _round8(v):
    return ((v + 7) // 8) * 8


def _choose_tm(M, *, tm_max=2048, tm_floor=512, min_steps=8):
    """Row-tile: >= min_steps grid steps when M is large (pipeline depth /
    both v7x TCs busy), but never below tm_floor rows (>=~85% of HBM roofline),
    capped at tm_max (VMEM is nowhere near the limit at these widths)."""
    if M < 8:
        return M                      # block rows == full array dim
    tm = _round8(pl.cdiv(M, min_steps))   # tile giving ~min_steps steps
    tm = max(tm, tm_floor)                # keep tiles roofline-friendly
    tm = min(tm, tm_max, _round8(M))      # never bigger than needed / allowed
    return tm


def vision_projection(vision_features, w1, b1, w2, b2, gamma, beta, *, tm=None):
    """vision_features: (batch, seq, VISION_HIDDEN) -> (batch, seq, LANGUAGE_HIDDEN)."""
    batch, seq, d_in = vision_features.shape
    d_fuse = w1.shape[1]
    d_out = w2.shape[1]
    assert w1.shape == (d_in, d_fuse) and w2.shape == (d_fuse, d_out)

    M = batch * seq
    if tm is None:
        tm = _choose_tm(M)
    grid = pl.cdiv(M, tm)

    x2d = vision_features.reshape(M, d_in)          # free view
    b1_2d = b1.reshape(1, d_fuse)
    b2_2d = b2.reshape(1, d_out)
    gamma_2d = gamma.reshape(1, d_out)
    beta_2d = beta.reshape(1, d_out)

    itemsize = jnp.dtype(vision_features.dtype).itemsize
    param_bytes = (w1.size + b1.size + w2.size + b2.size
                   + gamma.size + beta.size) * itemsize
    cost = pl.CostEstimate(
        flops=2 * M * (d_in * d_fuse + d_fuse * d_out),
        transcendentals=M * d_fuse,
        bytes_accessed=M * (d_in + d_out) * itemsize + param_bytes,
    )

    out2d = pl.pallas_call(
        _vision_projection_kernel,
        out_shape=jax.ShapeDtypeStruct((M, d_out), vision_features.dtype),
        grid_spec=pltpu.PrefetchScalarGridSpec(
            num_scalar_prefetch=0,
            grid=(grid,),
            in_specs=[
                pl.BlockSpec((tm, d_in), lambda i: (i, 0)),      # x tile
                pl.BlockSpec((d_in, d_fuse), lambda i: (0, 0)),  # W1 (resident)
                pl.BlockSpec((1, d_fuse), lambda i: (0, 0)),     # b1
                pl.BlockSpec((d_fuse, d_out), lambda i: (0, 0)), # W2 (resident)
                pl.BlockSpec((1, d_out), lambda i: (0, 0)),      # b2
                pl.BlockSpec((1, d_out), lambda i: (0, 0)),      # gamma
                pl.BlockSpec((1, d_out), lambda i: (0, 0)),      # beta
            ],
            out_specs=pl.BlockSpec((tm, d_out), lambda i: (i, 0)),
        ),
        compiler_params=pltpu.CompilerParams(
            dimension_semantics=("parallel",)),
        cost_estimate=cost,
    )(x2d, w1, b1_2d, w2, b2_2d, gamma_2d, beta_2d)

    return out2d.reshape(batch, seq, d_out)          # free view


def _reference(vision_features, w1, b1, w2, b2, gamma, beta):
    x = vision_features.astype(jnp.float32)
    h = x @ w1 + b1
    h = 0.5 * h * (1.0 + jax.lax.erf(h / jnp.sqrt(2.0)))
    y = h @ w2 + b2
    mu = jnp.mean(y, axis=-1, keepdims=True)
    var = jnp.mean((y - mu) ** 2, axis=-1, keepdims=True)
    return ((y - mu) * jax.lax.rsqrt(var + LN_EPS)) * gamma + beta


if __name__ == "__main__":
    key = jax.random.PRNGKey(0)
    k_x, k_w1, k_b1, k_w2, k_b2 = jax.random.split(key, 5)

    batch, seq = 2, 8
    x = jax.random.normal(k_x, (batch, seq, VISION_HIDDEN), dtype=jnp.float32)

    # deterministic parameter init (scaled like nn.Linear's uniform fan-in init)
    lim1 = 1.0 / math.sqrt(VISION_HIDDEN)
    lim2 = 1.0 / math.sqrt(FUSION_HIDDEN)
    w1 = jax.random.uniform(k_w1, (VISION_HIDDEN, FUSION_HIDDEN),
                            minval=-lim1, maxval=lim1, dtype=jnp.float32)
    b1 = jax.random.uniform(k_b1, (FUSION_HIDDEN,),
                            minval=-lim1, maxval=lim1, dtype=jnp.float32)
    w2 = jax.random.uniform(k_w2, (FUSION_HIDDEN, LANGUAGE_HIDDEN),
                            minval=-lim2, maxval=lim2, dtype=jnp.float32)
    b2 = jax.random.uniform(k_b2, (LANGUAGE_HIDDEN,),
                            minval=-lim2, maxval=lim2, dtype=jnp.float32)
    gamma = jnp.ones((LANGUAGE_HIDDEN,), dtype=jnp.float32)   # LayerNorm weight
    beta = jnp.zeros((LANGUAGE_HIDDEN,), dtype=jnp.float32)   # LayerNorm bias

    out = vision_projection(x, w1, b1, w2, b2, gamma, beta)
    out = jax.block_until_ready(out)

    ref = _reference(x, w1, b1, w2, b2, gamma, beta)
    assert out.shape == (batch, seq, LANGUAGE_HIDDEN), out.shape
    assert jnp.allclose(out, ref, atol=1e-4, rtol=1e-4), "mismatch vs pure-JAX reference"

    print("KERNEL_OK")
</pallas_src>

<mosaic_0001>
module attributes {stable_mosaic.version = 11 : i64} {
  func.func @_vision_projection_kernel(%arg0: i32, %arg1: memref<16x32xf32, #tpu.memory_space<vmem>>, %arg2: memref<32x64xf32, #tpu.memory_space<vmem>>, %arg3: memref<1x64xf32, #tpu.memory_space<vmem>>, %arg4: memref<64x48xf32, #tpu.memory_space<vmem>>, %arg5: memref<1x48xf32, #tpu.memory_space<vmem>>, %arg6: memref<1x48xf32, #tpu.memory_space<vmem>>, %arg7: memref<1x48xf32, #tpu.memory_space<vmem>>, %arg8: memref<16x48xf32, #tpu.memory_space<vmem>>) attributes {dimension_semantics = [#tpu.dimension_semantics<parallel>], iteration_bounds = array<i64: 1>, scalar_prefetch = 0 : i64, scratch_operands = 0 : i64, tpu.core_type = #tpu.core_type<tc>, window_params = [{transform_indices = @transform_0, window_bounds = array<i64: 16, 32>}, {pipeline_mode = #tpu.pipeline_mode<synchronous>, transform_indices = @transform_1, window_bounds = array<i64: 32, 64>}, {pipeline_mode = #tpu.pipeline_mode<synchronous>, transform_indices = @transform_2, window_bounds = array<i64: 1, 64>}, {pipeline_mode = #tpu.pipeline_mode<synchronous>, transform_indices = @transform_3, window_bounds = array<i64: 64, 48>}, {pipeline_mode = #tpu.pipeline_mode<synchronous>, transform_indices = @transform_4, window_bounds = array<i64: 1, 48>}, {pipeline_mode = #tpu.pipeline_mode<synchronous>, transform_indices = @transform_5, window_bounds = array<i64: 1, 48>}, {pipeline_mode = #tpu.pipeline_mode<synchronous>, transform_indices = @transform_6, window_bounds = array<i64: 1, 48>}, {transform_indices = @transform_7, window_bounds = array<i64: 16, 48>}]} {
    %c0 = arith.constant 0 : index
    %c0_0 = arith.constant 0 : index
    %0 = vector.load %arg1[%c0, %c0_0] : memref<16x32xf32, #tpu.memory_space<vmem>>, vector<16x32xf32>
    %c0_1 = arith.constant 0 : index
    %c0_2 = arith.constant 0 : index
    %1 = vector.load %arg2[%c0_1, %c0_2] : memref<32x64xf32, #tpu.memory_space<vmem>>, vector<32x64xf32>
    %cst = arith.constant dense<0.000000e+00> : vector<16x64xf32>
    %2 = tpu.matmul %0, %1, %cst {dimension_numbers = #tpu.dot_dimension_numbers<[1], [0], [0], [1], [0, 0, 1, 1], [], []>} : vector<16x32xf32>, vector<32x64xf32>, vector<16x64xf32> -> vector<16x64xf32>
    %c0_3 = arith.constant 0 : index
    %c0_4 = arith.constant 0 : index
    %3 = vector.load %arg3[%c0_3, %c0_4] : memref<1x64xf32, #tpu.memory_space<vmem>>, vector<1x64xf32>
    %4 = vector.broadcast %3 : vector<1x64xf32> to vector<16x64xf32>
    %5 = arith.addf %2, %4 : vector<16x64xf32>
    %cst_5 = arith.constant 5.000000e-01 : f32
    %6 = vector.broadcast %cst_5 : f32 to vector<16x64xf32>
    %7 = arith.mulf %6, %5 : vector<16x64xf32>
    %cst_6 = arith.constant 0.707106769 : f32
    %8 = vector.broadcast %cst_6 : f32 to vector<16x64xf32>
    %9 = arith.mulf %5, %8 : vector<16x64xf32>
    %10 = math.erf %9 : vector<16x64xf32>
    %cst_7 = arith.constant 1.000000e+00 : f32
    %11 = vector.broadcast %cst_7 : f32 to vector<16x64xf32>
    %12 = arith.addf %11, %10 : vector<16x64xf32>
    %13 = arith.mulf %7, %12 : vector<16x64xf32>
    %c0_8 = arith.constant 0 : index
    %c0_9 = arith.constant 0 : index
    %14 = vector.load %arg4[%c0_8, %c0_9] : memref<64x48xf32, #tpu.memory_space<vmem>>, vector<64x48xf32>
    %cst_10 = arith.constant dense<0.000000e+00> : vector<16x48xf32>
    %15 = tpu.matmul %13, %14, %cst_10 {dimension_numbers = #tpu.dot_dimension_numbers<[1], [0], [0], [1], [0, 0, 1, 1], [], []>} : vector<16x64xf32>, vector<64x48xf32>, vector<16x48xf32> -> vector<16x48xf32>
    %c0_11 = arith.constant 0 : index
    %c0_12 = arith.constant 0 : index
    %16 = vector.load %arg5[%c0_11, %c0_12] : memref<1x48xf32, #tpu.memory_space<vmem>>, vector<1x48xf32>
    %17 = vector.broadcast %16 : vector<1x48xf32> to vector<16x48xf32>
    %18 = arith.addf %15, %17 : vector<16x48xf32>
    %cst_13 = arith.constant dense<0.000000e+00> : vector<16xf32>
    %19 = vector.multi_reduction <add>, %18, %cst_13 [1] : vector<16x48xf32> to vector<16xf32>
    %20 = vector.shape_cast %19 : vector<16xf32> to vector<16x1xf32>
    %cst_14 = arith.constant 4.800000e+01 : f32
    %21 = vector.broadcast %cst_14 : f32 to vector<16x1xf32>
    %22 = arith.divf %20, %21 : vector<16x1xf32>
    %23 = vector.broadcast %22 : vector<16x1xf32> to vector<16x48xf32>
    %24 = arith.subf %18, %23 : vector<16x48xf32>
    %25 = arith.mulf %24, %24 : vector<16x48xf32>
    %cst_15 = arith.constant dense<0.000000e+00> : vector<16xf32>
    %26 = vector.multi_reduction <add>, %25, %cst_15 [1] : vector<16x48xf32> to vector<16xf32>
    %27 = vector.shape_cast %26 : vector<16xf32> to vector<16x1xf32>
    %cst_16 = arith.constant 4.800000e+01 : f32
    %28 = vector.broadcast %cst_16 : f32 to vector<16x1xf32>
    %29 = arith.divf %27, %28 : vector<16x1xf32>
    %cst_17 = arith.constant 9.99999974E-6 : f32
    %30 = vector.broadcast %cst_17 : f32 to vector<16x1xf32>
    %31 = arith.addf %29, %30 : vector<16x1xf32>
    %32 = math.rsqrt %31 : vector<16x1xf32>
    %33 = vector.broadcast %32 : vector<16x1xf32> to vector<16x48xf32>
    %34 = arith.mulf %24, %33 : vector<16x48xf32>
    %c0_18 = arith.constant 0 : index
    %c0_19 = arith.constant 0 : index
    %35 = vector.load %arg6[%c0_18, %c0_19] : memref<1x48xf32, #tpu.memory_space<vmem>>, vector<1x48xf32>
    %36 = vector.broadcast %35 : vector<1x48xf32> to vector<16x48xf32>
    %37 = arith.mulf %34, %36 : vector<16x48xf32>
    %c0_20 = arith.constant 0 : index
    %c0_21 = arith.constant 0 : index
    %38 = vector.load %arg7[%c0_20, %c0_21] : memref<1x48xf32, #tpu.memory_space<vmem>>, vector<1x48xf32>
    %39 = vector.broadcast %38 : vector<1x48xf32> to vector<16x48xf32>
    %40 = arith.addf %37, %39 : vector<16x48xf32>
    %c0_22 = arith.constant 0 : index
    %c0_23 = arith.constant 0 : index
    %41 = vector.load %arg8[%c0_22, %c0_23] : memref<16x48xf32, #tpu.memory_space<vmem>>, vector<16x48xf32>
    tpu.vector_store %arg8[%c0_22, %c0_23], %40 {strides = array<i32>} : memref<16x48xf32, #tpu.memory_space<vmem>>, vector<16x48xf32>,
    return
  }
  func.func @transform_0(%arg0: i32) -> (i32, i32) {
    %c0_i32 = arith.constant 0 : i32
    %c0_i32_0 = arith.constant 0 : i32
    return %arg0, %c0_i32 : i32, i32
  }
  func.func @transform_1(%arg0: i32) -> (i32, i32) {
    %c0_i32 = arith.constant 0 : i32
    %c0_i32_0 = arith.constant 0 : i32
    %c0_i32_1 = arith.constant 0 : i32
    return %c0_i32, %c0_i32_0 : i32, i32
  }
  func.func @transform_2(%arg0: i32) -> (i32, i32) {
    %c0_i32 = arith.constant 0 : i32
    %c0_i32_0 = arith.constant 0 : i32
    %c0_i32_1 = arith.constant 0 : i32
    return %c0_i32, %c0_i32_0 : i32, i32
  }
  func.func @transform_3(%arg0: i32) -> (i32, i32) {
    %c0_i32 = arith.constant 0 : i32
    %c0_i32_0 = arith.constant 0 : i32
    %c0_i32_1 = arith.constant 0 : i32
    return %c0_i32, %c0_i32_0 : i32, i32
  }
  func.func @transform_4(%arg0: i32) -> (i32, i32) {
    %c0_i32 = arith.constant 0 : i32
    %c0_i32_0 = arith.constant 0 : i32
    %c0_i32_1 = arith.constant 0 : i32
    return %c0_i32, %c0_i32_0 : i32, i32
  }
  func.func @transform_5(%arg0: i32) -> (i32, i32) {
    %c0_i32 = arith.constant 0 : i32
    %c0_i32_0 = arith.constant 0 : i32
    %c0_i32_1 = arith.constant 0 : i32
    return %c0_i32, %c0_i32_0 : i32, i32
  }
  func.func @transform_6(%arg0: i32) -> (i32, i32) {
    %c0_i32 = arith.constant 0 : i32
    %c0_i32_0 = arith.constant 0 : i32
    %c0_i32_1 = arith.constant 0 : i32
    return %c0_i32, %c0_i32_0 : i32, i32
  }
  func.func @transform_7(%arg0: i32) -> (i32, i32) {
    %c0_i32 = arith.constant 0 : i32
    %c0_i32_0 = arith.constant 0 : i32
    return %arg0, %c0_i32 : i32, i32
  }
}

</mosaic_0001>

<bundles_post_ra>
// kernel: tpu_custom_call.1
= control target key start
LH: loop header
LB: loop body
LE: loop exit
PB: predicated region body
PF: predicated region fallthrough
CT: control target
= control target key end

     0   :  { %vm40_vm0 = vcmask 261120   ;;  %s521_s0 = inlined_call_operand.vmem [shape: f32[16,32], index: 0, kind: input, shape index: {}]   ;;  %s522_s1 = inlined_call_operand.vmem [shape: f32[32,64], index: 1, kind: input, shape index: {}]   ;;  %s523_s2 = inlined_call_operand.vmem [shape: f32[1,64], index: 2, kind: input, shape index: {}]   ;;  %s524_s3 = inlined_call_operand.vmem [shape: f32[64,48], index: 3, kind: input, shape index: {}]   ;;  %s525_s4 = inlined_call_operand.vmem [shape: f32[1,48], index: 4, kind: input, shape index: {}]   ;;  %s526_s5 = inlined_call_operand.vmem [shape: f32[1,48], index: 5, kind: input, shape index: {}]   ;;  %s527_s6 = inlined_call_operand.vmem [shape: f32[1,48], index: 6, kind: input, shape index: {}]   ;;  %s528_s7 = inlined_call_operand.hbm [shape: f32[16,48], index: 7, kind: output, shape index: {}]  }
   0x1   :  { %v29_v0 = vld [vmem:[%s522_s1] sm:$0xff]  ;;  %v30_v1 = vld [vmem:[%s522_s1 + $0x8] sm:$0xff]  ;;  %v31_v2 = vld [vmem:[%s522_s1 + $0x10] sm:$0xff] }
   0x2   :  { %v347_v3 = vpack.c.bf16 %v30_v1, %v29_v0  ;;  %v32_v4 = vld [vmem:[%s522_s1 + $0x18] sm:$0xff]  ;;  %v27_v5 = vld [vmem:[%s521_s0] sm:$0xff] }
   0x3   :  { %v351_v6 = vpack.c.bf16 %v32_v4, %v31_v2  ;;  %325 = vmatprep.mubr.msk.f32.mxu0 %vm40_vm0, %v27_v5 }
   0x4   :  { %12 = vsyncpa [#allocation3], 0  ;;  %348 = vmatprep.subr.bf16.mxu0 %v347_v3  ;;  %v28_v7 = vld [vmem:[%s521_s0 + $0x8] sm:$0xff]  ;;  %v132_v8 = vld [vmem:[%s524_s3] sm:$0xff]  ;;  %vm147_vm1 = vcmask 523264   ;;  %vm229_vm2 = vcmask 392192  }
   0x5   :  { %350 = vmatpush3.bf16.msra.mxu0 %v347_v3  ;;  %v133_v9 = vld [vmem:[%s524_s3 + $0x8] sm:$0xff]  ;;  %v134_v11 = vld [vmem:[%s524_s3 + $0x10] sm:$0xff]  ;;  %v135_v12 = vld [vmem:[%s524_s3 + $0x18] sm:$0xff]  ;;  %s406_s9 = smov [#allocation2]  }
   0x6   :  { %352 = vmatprep.subr.bf16.mxu0 %v351_v6  ;;  %v355_v10 = vpack.c.bf16 %v133_v9, %v132_v8  ;;  %v359_v13 = vpack.c.bf16 %v135_v12, %v134_v11  ;;  %v136_v14 = vld [vmem:[%s524_s3 + $0x20] sm:$0xff]  ;;  %v137_v15 = vld [vmem:[%s524_s3 + $0x28] sm:$0xff]  ;;  %v138_v17 = vld [vmem:[%s524_s3 + $0x30] sm:$0xff]  ;;  %s282_s10 = sshll.u32 %s406_s9, 4  ;;  %s283_s10 = int_to_ptr.vmem [resolvable:$true] %s282_s10 }
   0x7   :  { %v363_v16 = vpack.c.bf16 %v137_v15, %v136_v14  ;;  %v139_v18 = vld [vmem:[%s524_s3 + $0x38] sm:$0xff]  ;;  %v293_v20 = vld [vmem:[%s523_s2] ss:$0 sm:$0xff]  ;;  %s382_s11 = scalar_lea.vmem %s283_s10, 256  ;;  %p387_p1 = scmp.lt.s32.totalorder %s283_s10, %s283_s10 }
   0x8   :  { %356 = vmatprep.subr.bf16.mxu1 %v355_v10  ;;  %v367_v19 = vpack.c.bf16 %v139_v18, %v138_v17  ;;  %v296_v35 = vld [vmem:[%s525_s4] ss:$0 sm:$0xff]  ;;  %p383_p0 = scmp.ne.s32.totalorder %s283_s10, %s382_s11  ;;  %p388_p2 = scmp.lt.s32.totalorder %s382_s11, %s382_s11 }
   0x9   :  { %354 = vmatpush3.bf16.msra.mxu0 %v351_v6  ;;  %358 = vmatpush3.bf16.msra.mxu1 %v355_v10  ;;  %v299_v59 = vld [vmem:[%s526_s5] ss:$0 sm:$0xff] }
   0xa   :  { %360 = vmatprep.subr.bf16.mxu1 %v359_v13  ;;  %v300_v61 = vld [vmem:[%s527_s6] ss:$0 sm:$0xff]  ;;  %p389_p3 = por %p388_p2, %p387_p1 }
   0xc   :  { %326 = vmatmul.mubr.msk.f32.vlgmr.msra.gmra.mrb[0].mxu0 %vm40_vm0, %v28_v7  ;;  %p390_p4 = pnand %p389_p3, %p383_p0 }
   0xd   :  { %362 = vmatpush3.bf16.msra.mxu1 %v359_v13 }
   0xe   :  { %364 = vmatprep.subr.bf16.mxu1 %v363_v16 }
  0x11   :  { %366 = vmatpush3.bf16.msra.mxu1 %v363_v16 }
  0x12   :  { %368 = vmatprep.subr.bf16.mxu1 %v367_v19 }
  0x15   :  { %370 = vmatpush3.bf16.msra.mxu1 %v367_v19 }
  0xdf   :  { %v327_v21 = vpop.f32.mrb[0].mxu0 }
  0xe0   :  { %v119_v22 = vadd.f32 %v327_v21, %v293_v20  ;;  %v113_v23 = vpop.f32.mrb[1].mxu0 }
  0xe1   :  { %v114_v24 = vadd.f32 %v293_v20, %v113_v23 }
  0xe2   :  { %v125_v25 = vmul.f32 0.70710677, %v119_v22  ;;  %v123_v32 = vmul.f32 0.5, %v119_v22 }
  0xe3   :  { %v124_v26 = vmul.f32 0.70710677, %v114_v24  ;;  %v122_v30 = vmul.f32 0.5, %v114_v24 }
  0xe4   :  { %374 = verf.f32 %v125_v25 }
  0xe5   :  { %376 = verf.f32 %v124_v26 }
  0xee   :  { %v375_v27 = vpop.eup %374 }
  0xef   :  { %v377_v28 = vpop.eup %376  ;;  %v129_v29 = vadd.f32 1.0, %v375_v27 }
  0xf0   :  { %v128_v31 = vadd.f32 1.0, %v377_v28 }
  0xf1   :  { %v131_v34 = vmul.f32 %v129_v29, %v123_v32 }
  0xf2   :  { %v130_v33 = vmul.f32 %v128_v31, %v122_v30 }
  0xf4   :  { %344 = vmatprep.mubr.msk.f32.mxu1 %vm147_vm1, %v130_v33 }
  0xf5   :  { %345 = vmatmul.mubr.msk.f32.vlgmr.msra.gmra.mrb[0].mxu1 %vm147_vm1, %v131_v34 }
 0x1c8   :  { %v346_v36 = vpop.f32.mrb[0].mxu1 }
 0x1c9   :  { %v220_v37 = vpop.f32.mrb[1].mxu1  ;;  %v226_v39 = vadd.f32 %v346_v36, %v296_v35 }
 0x1ca   :  { %v221_v38 = vadd.f32 %v296_v35, %v220_v37 }
 0x1cb   :  { %v233_v41 = vsel %vm229_vm2, %v226_v39, 0.0 }
 0x1cc   :  { %v230_v40 = vsel %vm229_vm2, %v221_v38, 0.0 }
 0x1cd   :  { %231 = vadd.xlane.f32.xlu0 %v230_v40 }
 0x1d1   :  { %234 = vadd.xlane.f32.xlu0 %v233_v41 }
 0x25a   :  { %v232_v42 = vpop.xlane.xlu0 %231 }
 0x25b   :  { %v237_v43 = vmul.f32 0.020833334, %v232_v42 }
 0x25d   :  { %v239_v44 = vsub.f32 %v221_v38, %v237_v43 }
 0x25e   :  { %v235_v45 = vpop.xlane.xlu0 %234 }
 0x25f   :  { %v238_v46 = vmul.f32 0.020833334, %v235_v45  ;;  %v241_v47 = vmul.f32 %v239_v44, %v239_v44 }
 0x261   :  { %v240_v48 = vsub.f32 %v226_v39, %v238_v46  ;;  %v243_v49 = vsel %vm229_vm2, %v241_v47, 0.0 }
 0x262   :  { %244 = vadd.xlane.f32.xlu1 %v243_v49 }
 0x263   :  { %v242_v50 = vmul.f32 %v240_v48, %v240_v48 }
 0x265   :  { %v246_v51 = vsel %vm229_vm2, %v242_v50, 0.0 }
 0x266   :  { %247 = vadd.xlane.f32.xlu1 %v246_v51 }
 0x2ef   :  { %v245_v52 = vpop.xlane.xlu1 %244 }
 0x2f0   :  { %v249_v53 = vmul.f32 0.020833334, %v245_v52 }
 0x2f2   :  { %v251_v54 = vadd.f32 1e-05, %v249_v53 }
 0x2f3   :  { %v248_v55 = vpop.xlane.xlu1 %247 }
 0x2f4   :  { %378 = vrsqrt.f32 %v251_v54  ;;  %v250_v56 = vmul.f32 0.020833334, %v248_v55 }
 0x2f6   :  { %v252_v57 = vadd.f32 1e-05, %v250_v56 }
 0x2f8   :  { %380 = vrsqrt.f32 %v252_v57 }
 0x2fe   :  { %v379_v58 = vpop.eup %378 }
 0x2ff   :  { %v255_v60 = vmul.f32 %v379_v58, %v239_v44 }
 0x301   :  { %v264_v62 = vmul.f32 %v299_v59, %v255_v60 }
 0x302   :  { %v381_v63 = vpop.eup %380 }
 0x303   :  { %v256_v0 = vmul.f32 %v381_v63, %v240_v48  ;;  %v273_v1 = vadd.f32 %v300_v61, %v264_v62 }
 0x305   :  { %v265_v2 = vmul.f32 %v299_v59, %v256_v0  ;;  %275 = vst.msk [vmem:[#allocation2] sm:$0xff] %vm229_vm2, %v273_v1 }
 0x307   :  { %v274_v3 = vadd.f32 %v300_v61, %v265_v2 }
 0x309   :  { %276 = vst.msk [vmem:[#allocation2 + $0x8] sm:$0xff] %vm229_vm2, %v274_v3 }
 0x30a   :  { %393 = shalt.err (!%p390_p4)
}
 0x30b   :  { %s394_s12 = scalar_lea.hbm %s528_s7, 256 }
 0x30c   :  { %p395_p5 = scmp.ne.s32.totalorder %s528_s7, %s394_s12  ;;  %p398_p6 = scmp.lt.u32.totalorder %s394_s12, %s528_s7 }
 0x30e   :  { %p400_p7 = pnand %p398_p6, %p395_p5 }
 0x310   :  { %403 = shalt.err (!%p400_p7)
}
 0x311   :  { %s407_s16 = smov 128   ;;  %s408_s17 = smov 8  }
 0x312   :  { %288 = dma.vmem_to_hbm [thread:$0]  %s283_s10, 256, %s528_s7, [#allocation3], %s407_s16, %s407_s16, %s408_s17  }
 0x313   :  { %404 = dma.done.wait [#allocation3], 256  }
 0x314   :  { %405 = vsyncadd [#allocation3], 4294967040 }
 0x315   :  { %292 = vsyncpa [#allocation3], 1 }

</bundles_post_ra>
